<compile_context>
chip_gen: v5e
topology: v5e:2x2
jax: 0.10.0
libtpu: 0.0.40
codegen_flags: <defaults>
</compile_context>

<pallas_src>
import math
from functools import partial

import jax
import jax.numpy as jnp
from jax.experimental import pallas as pl
from jax.experimental.pallas import tpu as pltpu

COMPUTE_DTYPE = jnp.bfloat16      # MXU inputs AND inter-kernel activations
LN_EPS = 1e-6
NEG_INF = -1e18                   # must stay f32 (scores / bias are f32 in-kernel)
VMEM_LIMIT = 48 * 1024 * 1024     # <= v7x 64 MiB physical; plenty of headroom on v5e/v6e


# ----------------------------- tiling helpers -----------------------------

def _round_up(x, m):
    return ((x + m - 1) // m) * m


def _pick_tile(dim, target, align):
    """Largest tile <= target that is a multiple of `align` and divides `dim`;
    falls back to the full dimension (always BlockSpec-legal)."""
    if dim <= target:
        return dim
    t = (target // align) * align
    while t >= align:
        if dim % t == 0:
            return t
        t -= align
    return dim


def _row_tiling(M, target=512):
    """(padded_M, tm). Avoids tm=8 starvation and unbounded full-M fallbacks:
    small M -> single full block; large M -> 128-multiple divisor or zero-pad rows."""
    if M <= target:
        return M, M
    t = target
    while t >= 128:
        if M % t == 0:
            return M, t
        t -= 128
    return _round_up(M, 256), 256


def _dh_padded(dh):
    """Pad per-head dim to a 128-lane boundary when the FLOP overhead is modest
    (e.g. dh=96 -> 128, +33%): aligned head slices, full-width MXU passes."""
    if dh % 128 == 0:
        return dh
    p = _round_up(dh, 128)
    if p - dh <= dh // 2:
        return p
    return dh


def _head_group(heads, dh):
    """Smallest head-group g (dividing heads) with g*dh a multiple of 128 so the
    attention blocks are lane-dense; fallback: all heads (block == full width)."""
    for g in range(1, heads + 1):
        if heads % g == 0 and (g * dh) % 128 == 0:
            return g
    return heads


def _gelu(y):
    # PreSumm / BertSum gelu (tanh approximation)
    c = math.sqrt(2.0 / math.pi)
    return 0.5 * y * (1.0 + jnp.tanh(c * (y + 0.044715 * y * y * y)))


# ----------------------------- fused linear kernels -----------------------------

def _linear_single_kernel(*refs, act, use_ln, has_res):
    """Single K-pass: y = act(LN?(x) @ w + b) (+res). LN is computed once per row
    tile (at j == 0) into a bf16 VMEM scratch and reused across all N tiles."""
    i = 0
    x_ref = refs[i]; i += 1
    w_ref = refs[i]; i += 1
    b_ref = refs[i]; i += 1
    if use_ln:
        g_ref = refs[i]; i += 1
        be_ref = refs[i]; i += 1
    if has_res:
        r_ref = refs[i]; i += 1
    o_ref = refs[i]; i += 1
    if use_ln:
        xn_ref = refs[i]; i += 1

    if use_ln:
        @pl.when(pl.program_id(1) == 0)
        def _():
            x = x_ref[...].astype(jnp.float32)
            mean = jnp.mean(x, axis=-1, keepdims=True)
            var = jnp.mean((x - mean) ** 2, axis=-1, keepdims=True)
            xn_ref[...] = ((x - mean) * jax.lax.rsqrt(var + LN_EPS)
                           * g_ref[...] + be_ref[...]).astype(COMPUTE_DTYPE)
        xin = xn_ref[...]
    else:
        xin = x_ref[...].astype(COMPUTE_DTYPE)

    y = jnp.dot(xin, w_ref[...], preferred_element_type=jnp.float32) + b_ref[...]
    if act == "gelu":
        y = _gelu(y)
    if has_res:
        y = y + r_ref[...].astype(jnp.float32)
    o_ref[...] = y.astype(o_ref.dtype)


def _linear_acc_kernel(*refs, act, has_res):
    """Tiled (M, N, K) matmul with f32 VMEM accumulator (no LN on this path)."""
    i = 0
    x_ref = refs[i]; i += 1
    w_ref = refs[i]; i += 1
    b_ref = refs[i]; i += 1
    if has_res:
        r_ref = refs[i]; i += 1
    o_ref = refs[i]; i += 1
    acc_ref = refs[i]

    k = pl.program_id(2)

    @pl.when(k == 0)
    def _():
        acc_ref[...] = jnp.zeros_like(acc_ref)

    acc_ref[...] += jnp.dot(x_ref[...].astype(COMPUTE_DTYPE), w_ref[...],
                            preferred_element_type=jnp.float32)

    @pl.when(k == pl.num_programs(2) - 1)
    def _():
        y = acc_ref[...] + b_ref[...]
        if act == "gelu":
            y = _gelu(y)
        if has_res:
            y = y + r_ref[...].astype(jnp.float32)
        o_ref[...] = y.astype(o_ref.dtype)


def pallas_linear(x2d, w, b, *, gamma=None, beta=None, residual=None, act="none",
                  out_dtype=COMPUTE_DTYPE):
    """y = act(LN?(x2d) @ w + b) (+ residual).
    x2d: (M, K); w: (K, N) pre-cast bf16; b/gamma/beta pre-shaped (1, *) f32."""
    M, K = x2d.shape
    _, N = w.shape
    use_ln = gamma is not None
    has_res = residual is not None

    Mp, tm = _row_tiling(M)
    if Mp != M:
        x2d = jnp.pad(x2d, ((0, Mp - M), (0, 0)))
        if has_res:
            residual = jnp.pad(residual, ((0, Mp - M), (0, 0)))

    tn = _pick_tile(N, 512, 128)
    # LayerNorm reduces over the full feature dim -> LN path always uses tk == K.
    tk = K if use_ln else _pick_tile(K, 512, 128)

    if tk == K:
        grid = (Mp // tm, N // tn)
        in_specs = [
            pl.BlockSpec((tm, K), lambda i, j: (i, 0)),     # constant in j -> fetched once
            pl.BlockSpec((K, tn), lambda i, j: (0, j)),
            pl.BlockSpec((1, tn), lambda i, j: (0, j)),
        ]
        inputs = [x2d, w, b]
        if use_ln:
            in_specs += [pl.BlockSpec((1, K), lambda i, j: (0, 0)),
                         pl.BlockSpec((1, K), lambda i, j: (0, 0))]
            inputs += [gamma, beta]
        if has_res:
            in_specs.append(pl.BlockSpec((tm, tn), lambda i, j: (i, j)))
            inputs.append(residual)
        scratch = [pltpu.VMEM((tm, K), COMPUTE_DTYPE)] if use_ln else []
        # j must stay sequential per core when LN is cached at j == 0
        sem = ("parallel", "arbitrary") if use_ln else ("parallel", "parallel")
        out = pl.pallas_call(
            partial(_linear_single_kernel, act=act, use_ln=use_ln, has_res=has_res),
            out_shape=jax.ShapeDtypeStruct((Mp, N), out_dtype),
            grid=grid,
            in_specs=in_specs,
            out_specs=pl.BlockSpec((tm, tn), lambda i, j: (i, j)),
            scratch_shapes=scratch,
            compiler_params=pltpu.CompilerParams(
                dimension_semantics=sem, vmem_limit_bytes=VMEM_LIMIT),
        )(*inputs)
    else:
        grid = (Mp // tm, N // tn, K // tk)
        in_specs = [
            pl.BlockSpec((tm, tk), lambda i, j, k: (i, k)),
            pl.BlockSpec((tk, tn), lambda i, j, k: (k, j)),
            pl.BlockSpec((1, tn), lambda i, j, k: (0, j)),
        ]
        inputs = [x2d, w, b]
        if has_res:
            in_specs.append(pl.BlockSpec((tm, tn), lambda i, j, k: (i, j)))
            inputs.append(residual)
        out = pl.pallas_call(
            partial(_linear_acc_kernel, act=act, has_res=has_res),
            out_shape=jax.ShapeDtypeStruct((Mp, N), out_dtype),
            grid=grid,
            in_specs=in_specs,
            out_specs=pl.BlockSpec((tm, tn), lambda i, j, k: (i, j)),
            scratch_shapes=[pltpu.VMEM((tm, tn), jnp.float32)],
            compiler_params=pltpu.CompilerParams(
                dimension_semantics=("parallel", "parallel", "arbitrary"),
                vmem_limit_bytes=VMEM_LIMIT),
        )(*inputs)

    return out if Mp == M else out[:M]


# ----------------------------- row-tiled layernorm -----------------------------

def _layernorm_kernel(x_ref, g_ref, b_ref, o_ref):
    x = x_ref[...].astype(jnp.float32)
    mean = jnp.mean(x, axis=-1, keepdims=True)
    var = jnp.mean((x - mean) ** 2, axis=-1, keepdims=True)
    y = (x - mean) * jax.lax.rsqrt(var + LN_EPS)
    o_ref[...] = (y * g_ref[...] + b_ref[...]).astype(o_ref.dtype)


def pallas_layernorm(x2d, gamma, beta, out_dtype=COMPUTE_DTYPE):
    M, D = x2d.shape
    Mp, tm = _row_tiling(M)
    if Mp != M:
        x2d = jnp.pad(x2d, ((0, Mp - M), (0, 0)))
    out = pl.pallas_call(
        _layernorm_kernel,
        out_shape=jax.ShapeDtypeStruct((Mp, D), out_dtype),
        grid=(Mp // tm,),
        in_specs=[pl.BlockSpec((tm, D), lambda i: (i, 0)),
                  pl.BlockSpec((1, D), lambda i: (0, 0)),
                  pl.BlockSpec((1, D), lambda i: (0, 0))],
        out_specs=pl.BlockSpec((tm, D), lambda i: (i, 0)),
        compiler_params=pltpu.CompilerParams(
            dimension_semantics=("parallel",), vmem_limit_bytes=VMEM_LIMIT),
    )(x2d, gamma, beta)
    return out if Mp == M else out[:M]


# ----------------------------- attention -----------------------------

def _attention_kernel(q_ref, k_ref, v_ref, m_ref, *out_refs, hg, dh, need_attn):
    if need_attn:
        ctx_ref, attn_ref = out_refs
    else:
        (ctx_ref,) = out_refs

    bias = m_ref[0].astype(jnp.float32)           # (1, Lk) additive: 0 or -1e18 on pad (f32!)
    for h in range(hg):                            # static unroll over heads in the group
        lo, hi = h * dh, (h + 1) * dh
        qh = q_ref[0, :, lo:hi].astype(COMPUTE_DTYPE)       # (Lq, Dh) lane-aligned slice
        kh = k_ref[0, :, lo:hi].astype(COMPUTE_DTYPE)       # (Lk, Dh)
        vh = v_ref[0, :, lo:hi].astype(COMPUTE_DTYPE)       # (Lk, Dh)
        # q @ k^T without an explicit transpose (contract on Dh of both); f32 scores.
        s = jax.lax.dot_general(qh, kh, (((1,), (1,)), ((), ())),
                                preferred_element_type=jnp.float32)
        s = s + bias
        m = jnp.max(s, axis=-1, keepdims=True)
        p = jnp.exp(s - m)
        l = jnp.sum(p, axis=-1, keepdims=True)
        a = p * pl.reciprocal(l, approx=True)      # EUP divide
        # per-head store: releases this head's score matrix immediately
        ctx_ref[0, :, lo:hi] = jnp.dot(a.astype(COMPUTE_DTYPE), vh,
                                       preferred_element_type=jnp.float32
                                       ).astype(ctx_ref.dtype)
        if need_attn and h == 0:
            # only head 0 of head-group 0 is ever consumed (PreSumm returns attn[:, 0])
            @pl.when(pl.program_id(1) == 0)
            def _():
                attn_ref[0] = a.astype(attn_ref.dtype)


def pallas_attention(q_arr, k_arr, v_arr, mask_bias, *, heads, dh_p, hg, offs, need_attn):
    """q_arr: (B, Lq, >=hg*dh_p), k/v: (B, Lk, >=hg*dh_p), mask_bias: (B, 1, Lk) additive f32.
    `offs` are block offsets (in hg*dh_p units) into the packed q/k/v arrays."""
    B, Lq, _ = q_arr.shape
    _, Lk, _ = k_arr.shape
    hd = hg * dh_p
    G = heads // hg
    q_off, k_off, v_off = offs

    in_specs = [
        pl.BlockSpec((1, Lq, hd), lambda b, g, o=q_off: (b, 0, o + g)),
        pl.BlockSpec((1, Lk, hd), lambda b, g, o=k_off: (b, 0, o + g)),
        pl.BlockSpec((1, Lk, hd), lambda b, g, o=v_off: (b, 0, o + g)),
        pl.BlockSpec((1, 1, Lk), lambda b, g: (b, 0, 0)),
    ]
    ctx_shape = jax.ShapeDtypeStruct((B, Lq, heads * dh_p), COMPUTE_DTYPE)
    ctx_spec = pl.BlockSpec((1, Lq, hd), lambda b, g: (b, 0, g))

    if need_attn:
        out_shape = (ctx_shape, jax.ShapeDtypeStruct((B, Lq, Lk), jnp.float32))
        out_specs = (ctx_spec, pl.BlockSpec((1, Lq, Lk), lambda b, g: (b, 0, 0)))
        sem = ("parallel", "arbitrary")            # attn block is revisited across g
    else:
        out_shape = ctx_shape
        out_specs = ctx_spec
        sem = ("parallel", "parallel")

    res = pl.pallas_call(
        partial(_attention_kernel, hg=hg, dh=dh_p, need_attn=need_attn),
        out_shape=out_shape,
        grid=(B, G),
        in_specs=in_specs,
        out_specs=out_specs,
        compiler_params=pltpu.CompilerParams(
            dimension_semantics=sem, vmem_limit_bytes=VMEM_LIMIT),
    )(q_arr, k_arr, v_arr, mask_bias)

    if need_attn:
        ctx, attn = res
        return ctx, attn
    return res, None


# ----------------------------- fused scoring head -----------------------------

def _score_kernel(x_ref, g_ref, be_ref, w1_ref, b1_ref, w2_ref, b2_ref, m_ref, o_ref):
    x = x_ref[0].astype(jnp.float32)              # (L, D)
    mean = jnp.mean(x, axis=-1, keepdims=True)
    var = jnp.mean((x - mean) ** 2, axis=-1, keepdims=True)
    xn = (x - mean) * jax.lax.rsqrt(var + LN_EPS) * g_ref[...] + be_ref[...]
    h = jnp.dot(xn.astype(COMPUTE_DTYPE), w1_ref[...],
                preferred_element_type=jnp.float32) + b1_ref[...]
    s = jnp.dot(h.astype(COMPUTE_DTYPE), w2_ref[...],
                preferred_element_type=jnp.float32) + b2_ref[...]     # (L, 1)
    o_ref[0] = (jax.nn.sigmoid(s) * m_ref[0]).astype(o_ref.dtype)


def pallas_score_head(x, gamma, beta, w1, b1, w2, b2, mask_f):
    """sigmoid(wo2(wo1(LN(x)))) * mask, fused; x: (B, L, D), mask_f: (B, L)."""
    B, L, D = x.shape
    out = pl.pallas_call(
        _score_kernel,
        out_shape=jax.ShapeDtypeStruct((B, L, 1), jnp.float32),
        grid=(B,),
        in_specs=[
            pl.BlockSpec((1, L, D), lambda b: (b, 0, 0)),
            pl.BlockSpec((1, D), lambda b: (0, 0)),
            pl.BlockSpec((1, D), lambda b: (0, 0)),
            pl.BlockSpec((D, D), lambda b: (0, 0)),
            pl.BlockSpec((1, D), lambda b: (0, 0)),
            pl.BlockSpec((D, 1), lambda b: (0, 0)),
            pl.BlockSpec((1, 1), lambda b: (0, 0)),
            pl.BlockSpec((1, L, 1), lambda b: (b, 0, 0)),
        ],
        out_specs=pl.BlockSpec((1, L, 1), lambda b: (b, 0, 0)),
        compiler_params=pltpu.CompilerParams(
            dimension_semantics=("parallel",), vmem_limit_bytes=VMEM_LIMIT),
    )(x, gamma, beta, w1, b1, w2, b2, mask_f.reshape(B, L, 1))
    return out.reshape(B, L)


# ----------------------------- module glue (plain JAX) -----------------------------

def _self_attention_block(mha, x, ln, mask_bias, need_attn):
    """OpenNMT/PreSumm MHA with key=value=query=LN?(x); residual (+x) fused in."""
    B, L, D = x.shape
    H, dh_p, hg = mha["heads"], mha["dh_p"], mha["hg"]
    Hp = H * dh_p
    x2d = x.reshape(B * L, D)

    # fused QKV projection (weights pre-concatenated / pre-scaled / head-padded / bf16)
    qkv = pallas_linear(x2d, mha["wqkv"], mha["bqkv"],
                        gamma=None if ln is None else ln[0],
                        beta=None if ln is None else ln[1])
    qkv3 = qkv.reshape(B, L, 3 * Hp)

    G = H // hg
    if (hg * dh_p) % 128 == 0:                    # lane-dense head-group slicing
        qa = ka = va = qkv3
        offs = (0, G, 2 * G)
    else:                                         # small-D fallback: split q/k/v
        qa, ka, va = qkv3[..., :Hp], qkv3[..., Hp:2 * Hp], qkv3[..., 2 * Hp:]
        offs = (0, 0, 0)

    ctx, attn = pallas_attention(qa, ka, va, mask_bias,
                                 heads=H, dh_p=dh_p, hg=hg, offs=offs, need_attn=need_attn)
    out = pallas_linear(ctx.reshape(B * L, Hp), mha["wout"], mha["bout"],
                        residual=x2d)             # context + inputs fused
    return out.reshape(B, L, D), attn


def _cross_attention_block(mha, kv_in, query_in, mask_bias, kv_ln=None):
    """MHA with key=value=kv_in, query=query_in; residual (+query) fused in.
    Optional LayerNorm on key/value is fused into the KV projection."""
    B, Lq, D = query_in.shape
    Bk, Lk, _ = kv_in.shape
    H, dh_p, hg = mha["heads"], mha["dh_p"], mha["hg"]
    Hp = H * dh_p

    kv = pallas_linear(kv_in.reshape(Bk * Lk, D), mha["wkv"], mha["bkv"],
                       gamma=None if kv_ln is None else kv_ln[0],
                       beta=None if kv_ln is None else kv_ln[1]).reshape(Bk, Lk, 2 * Hp)
    q = pallas_linear(query_in.reshape(B * Lq, D),
                      mha["wq"], mha["bq"]).reshape(B, Lq, Hp)

    G = H // hg
    if (hg * dh_p) % 128 == 0:
        qa, ka, va = q, kv, kv
        offs = (0, 0, G)
    else:
        qa, ka, va = q, kv[..., :Hp], kv[..., Hp:]
        offs = (0, 0, 0)

    ctx, attn = pallas_attention(qa, ka, va, mask_bias,
                                 heads=H, dh_p=dh_p, hg=hg, offs=offs, need_attn=True)
    out = pallas_linear(ctx.reshape(B * Lq, Hp), mha["wout"], mha["bout"],
                        residual=query_in.reshape(B * Lq, D))
    return out.reshape(B, Lq, D), attn


def feed_forward(ffp, x):
    """PositionwiseFeedForward: w2(gelu(w1(LN(x)))) + x, fully fused (dropout=id)."""
    B, L, D = x.shape
    x2d = x.reshape(B * L, D)
    inter = pallas_linear(x2d, ffp["w1"], ffp["b1"],
                          gamma=ffp["ln_g"], beta=ffp["ln_b"], act="gelu")
    out = pallas_linear(inter, ffp["w2"], ffp["b2"], residual=x2d)
    return out.reshape(B, L, D)


def transformer_encoder_layer(p, it, inputs, mask_bias, need_attn=False):
    ln = None if it == 0 else (p["ln_g"], p["ln_b"])   # pre-LN fused into the QKV kernel
    out, attn = _self_attention_block(p["attn"], inputs, ln, mask_bias, need_attn)
    return feed_forward(p["ff"], out), attn


def image_encoder_layer(p, it, kv_in, query_in, mask_bias):
    kv_ln = None
    if it != 0:
        B, Lq, D = query_in.shape
        # query is rebound to LN(query) and also used as the residual -> standalone LN
        query_in = pallas_layernorm(query_in.reshape(B * Lq, D),
                                    p["ln_g"], p["ln_b"]).reshape(B, Lq, D)
        kv_ln = (p["ln_g"], p["ln_b"])                 # key/value LN fused into KV proj
    out, attn = _cross_attention_block(p["attn"], kv_in, query_in, mask_bias, kv_ln=kv_ln)
    return feed_forward(p["ff"], out), attn


def ext_image_transformer_encoder2(prep, top_vecs, mask, image_data):
    B, L, D = top_vecs.shape
    Bi, Ni, _ = image_data.shape
    f32 = jnp.float32

    # img_fn: Sequential(Linear(2048,1024), Linear(1024,768)) -- scaled-down dims here.
    h = pallas_linear(image_data.reshape(Bi * Ni, -1), prep["img1_w"], prep["img1_b"])
    image = pallas_linear(h, prep["img2_w"], prep["img2_b"]).reshape(Bi, Ni, D)

    pos_emb = prep["pe"][:, :L]                    # pe accessed directly (no sqrt(dim) scaling)
    x = (top_vecs * mask[:, :, None].astype(f32) + pos_emb).astype(COMPUTE_DTYPE)

    # additive padding bias: 0 where valid, -1e18 where padded (== masked_fill(-1e18)); f32!
    pad_bias_x = jnp.where(mask, 0.0, NEG_INF).astype(f32)[:, None, :]     # (B, 1, L)
    zero_bias_img = jnp.zeros((Bi, 1, Ni), f32)                            # image_mask all True

    for i, lp in enumerate(prep["inter"]):
        x, _ = transformer_encoder_layer(lp, i, x, pad_bias_x, need_attn=False)
    x = pallas_layernorm(x.reshape(B * L, D), prep["ln_g"], prep["ln_b"]).reshape(B, L, D)

    for i, lp in enumerate(prep["image_inter"]):
        image, _ = transformer_encoder_layer(lp, i, image, zero_bias_img, need_attn=False)
    image = pallas_layernorm(image.reshape(Bi * Ni, D),
                             prep["ln_g"], prep["ln_b"]).reshape(Bi, Ni, D)

    attn_list = []
    for i, lp in enumerate(prep["context_inter"]):
        x, attn = image_encoder_layer(lp, i, image, x, zero_bias_img)
        attn_list.append(attn)

    # final LN + wo1 + wo2 + sigmoid + mask, fused into one kernel
    sent_scores = pallas_score_head(x, prep["ln_g"], prep["ln_b"],
                                    prep["wo1_w"], prep["wo1_b"],
                                    prep["wo2_w"], prep["wo2_b"], mask.astype(f32))
    return sent_scores, attn_list


# ----------------------------- one-time weight preparation -----------------------------

def _pad_head_cols(w, b, heads, dh, dh_p):
    """(Din, heads*dh) -> (Din, heads*dh_p): zero-padded per-head columns."""
    if dh_p == dh:
        return w, b
    d_in = w.shape[0]
    w = jnp.pad(w.reshape(d_in, heads, dh), ((0, 0), (0, 0), (0, dh_p - dh)))
    b = jnp.pad(b.reshape(heads, dh), ((0, 0), (0, dh_p - dh)))
    return w.reshape(d_in, heads * dh_p), b.reshape(heads * dh_p)


def _pad_head_rows(w, heads, dh, dh_p):
    """(heads*dh, Dout) -> (heads*dh_p, Dout): zero rows at padded channels."""
    if dh_p == dh:
        return w
    d_out = w.shape[1]
    w = jnp.pad(w.reshape(heads, dh, d_out), ((0, 0), (0, dh_p - dh), (0, 0)))
    return w.reshape(heads * dh_p, d_out)


def _prep_mha(mha, d_model, self_attn):
    H = mha["heads"]
    dh = d_model // H
    dh_p = _dh_padded(dh)
    scale = 1.0 / math.sqrt(dh)                    # scale uses the true per-head dim
    wq, bq = _pad_head_cols(mha["q"]["w"] * scale, mha["q"]["b"] * scale, H, dh, dh_p)
    wk, bk = _pad_head_cols(mha["k"]["w"], mha["k"]["b"], H, dh, dh_p)
    wv, bv = _pad_head_cols(mha["v"]["w"], mha["v"]["b"], H, dh, dh_p)
    out = {
        "heads": H, "dh_p": dh_p, "hg": _head_group(H, dh_p),
        "wout": _pad_head_rows(mha["out"]["w"], H, dh, dh_p).astype(COMPUTE_DTYPE),
        "bout": mha["out"]["b"].reshape(1, -1),
    }
    if self_attn:
        out["wqkv"] = jnp.concatenate([wq, wk, wv], axis=1).astype(COMPUTE_DTYPE)
        out["bqkv"] = jnp.concatenate([bq, bk, bv]).reshape(1, -1)
    else:
        out["wq"] = wq.astype(COMPUTE_DTYPE)
        out["bq"] = bq.reshape(1, -1)
        out["wkv"] = jnp.concatenate([wk, wv], axis=1).astype(COMPUTE_DTYPE)
        out["bkv"] = jnp.concatenate([bk, bv]).reshape(1, -1)
    return out


def _prep_ff(ff):
    return {"ln_g": ff["ln"]["g"].reshape(1, -1), "ln_b": ff["ln"]["b"].reshape(1, -1),
            "w1": ff["w1"]["w"].astype(COMPUTE_DTYPE), "b1": ff["w1"]["b"].reshape(1, -1),
            "w2": ff["w2"]["w"].astype(COMPUTE_DTYPE), "b2": ff["w2"]["b"].reshape(1, -1)}


def _prep_enc_layer(lp, d_model, self_attn):
    return {"attn": _prep_mha(lp["attn"], d_model, self_attn),
            "ff": _prep_ff(lp["ff"]),
            "ln_g": lp["ln"]["g"].reshape(1, -1), "ln_b": lp["ln"]["b"].reshape(1, -1)}


def prepare_params(p, d_model):
    """Done ONCE (not per forward): bf16 casts, QKV/KV concat, 1/sqrt(Dh) folding,
    head-channel padding to 128 lanes, bias reshapes."""
    return {
        "pe": p["pe"],
        "inter": [_prep_enc_layer(lp, d_model, True) for lp in p["inter"]],
        "image_inter": [_prep_enc_layer(lp, d_model, True) for lp in p["image_inter"]],
        "context_inter": [_prep_enc_layer(lp, d_model, False) for lp in p["context_inter"]],
        "ln_g": p["ln"]["g"].reshape(1, -1), "ln_b": p["ln"]["b"].reshape(1, -1),
        "wo1_w": p["wo1"]["w"].astype(COMPUTE_DTYPE), "wo1_b": p["wo1"]["b"].reshape(1, -1),
        "wo2_w": p["wo2"]["w"].astype(COMPUTE_DTYPE), "wo2_b": p["wo2"]["b"].reshape(1, 1),
        "img1_w": p["img_fn1"]["w"].astype(COMPUTE_DTYPE), "img1_b": p["img_fn1"]["b"].reshape(1, -1),
        "img2_w": p["img_fn2"]["w"].astype(COMPUTE_DTYPE), "img2_b": p["img_fn2"]["b"].reshape(1, -1),
    }


# ----------------------------- parameter init -----------------------------

def _init_linear(key, din, dout, scale=0.02):
    kw, kb = jax.random.split(key)
    return {"w": scale * jax.random.normal(kw, (din, dout), dtype=jnp.float32),
            "b": scale * jax.random.normal(kb, (dout,), dtype=jnp.float32)}


def _init_layernorm(d):
    return {"g": jnp.ones((d,), jnp.float32), "b": jnp.zeros((d,), jnp.float32)}


def _init_mha(key, d_model, heads):
    ks = jax.random.split(key, 4)
    return {"heads": heads,
            "k": _init_linear(ks[0], d_model, d_model),
            "v": _init_linear(ks[1], d_model, d_model),
            "q": _init_linear(ks[2], d_model, d_model),
            "out": _init_linear(ks[3], d_model, d_model)}


def _init_ff(key, d_model, d_ff):
    k1, k2 = jax.random.split(key)
    return {"ln": _init_layernorm(d_model),
            "w1": _init_linear(k1, d_model, d_ff),
            "w2": _init_linear(k2, d_ff, d_model)}


def _init_enc_layer(key, d_model, heads, d_ff):
    k1, k2 = jax.random.split(key)
    return {"attn": _init_mha(k1, d_model, heads),
            "ff": _init_ff(k2, d_model, d_ff),
            "ln": _init_layernorm(d_model)}


def make_pos_encoding(dim, max_len):
    position = jnp.arange(max_len, dtype=jnp.float32)[:, None]
    div_term = jnp.exp(jnp.arange(0, dim, 2, dtype=jnp.float32) * -(math.log(10000.0) / dim))
    pe = jnp.zeros((max_len, dim), jnp.float32)
    pe = pe.at[:, 0::2].set(jnp.sin(position * div_term))
    pe = pe.at[:, 1::2].set(jnp.cos(position * div_term))
    return pe[None]                                        # (1, max_len, dim)


def init_params(key, d_model, d_ff, heads, num_inter_layers, num_image_layer,
                img_in, img_mid, max_len):
    keys = jax.random.split(key, 8)
    inter_keys = jax.random.split(keys[0], max(num_inter_layers, 1))
    image_keys = jax.random.split(keys[1], num_image_layer)
    ctx_keys = jax.random.split(keys[2], num_image_layer)
    return {
        "pe": make_pos_encoding(d_model, max_len),
        "inter": [_init_enc_layer(inter_keys[i], d_model, heads, d_ff)
                  for i in range(num_inter_layers)],
        "image_inter": [_init_enc_layer(image_keys[i], d_model, heads, d_ff)
                        for i in range(num_image_layer)],
        "context_inter": [_init_enc_layer(ctx_keys[i], d_model, heads, d_ff)
                          for i in range(num_image_layer)],
        "ln": _init_layernorm(d_model),
        "wo1": _init_linear(keys[3], d_model, d_model),
        "wo2": _init_linear(keys[4], d_model, 1),
        "img_fn1": _init_linear(keys[5], img_in, img_mid),
        "img_fn2": _init_linear(keys[6], img_mid, d_model),
    }


# ----------------------------- main -----------------------------

if __name__ == "__main__":
    # Small shapes structurally consistent with the module (original hard-codes
    # d_model=768, heads=8 -> dh=96; scaled down to d_model=192, heads=2 -> dh=96 so
    # the 96->128 head-channel padding / lane-aligned attention path is exercised).
    D_MODEL, D_FF, HEADS = 192, 384, 2
    NUM_INTER_LAYERS = 2
    NUM_IMAGE_LAYER = 1
    IMG_IN, IMG_MID = 256, 224
    B, N_SENTS, N_IMG = 2, 8, 4

    root = jax.random.PRNGKey(0)
    k_params, k_top, k_img = jax.random.split(root, 3)

    params = init_params(k_params, D_MODEL, D_FF, HEADS, NUM_INTER_LAYERS,
                         NUM_IMAGE_LAYER, IMG_IN, IMG_MID, max_len=64)
    prepared = prepare_params(params, D_MODEL)     # one-time weight prep (hoisted)
    jax.block_until_ready(prepared)

    top_vecs = jax.random.normal(k_top, (B, N_SENTS, D_MODEL), dtype=jnp.float32)
    image_data = jax.random.normal(k_img, (B, N_IMG, IMG_IN), dtype=jnp.float32)
    mask = jnp.array([[True] * N_SENTS,
                      [True] * (N_SENTS - 3) + [False] * 3], dtype=bool)

    sent_scores, attn_list = ext_image_transformer_encoder2(prepared, top_vecs, mask, image_data)
    jax.block_until_ready(sent_scores)
    for a in attn_list:
        jax.block_until_ready(a)

    assert sent_scores.shape == (B, N_SENTS)
    assert attn_list[0].shape == (B, N_SENTS, N_IMG)
    assert bool(jnp.all(jnp.isfinite(sent_scores)))
    print("KERNEL_OK")
</pallas_src>

<mosaic_0001>
module attributes {stable_mosaic.version = 11 : i64} {
  func.func @_linear_single_kernel(%arg0: i32, %arg1: i32, %arg2: memref<8x256xf32, #tpu.memory_space<vmem>>, %arg3: memref<256x224xbf16, #tpu.memory_space<vmem>>, %arg4: memref<1x224xf32, #tpu.memory_space<vmem>>, %arg5: memref<8x224xbf16, #tpu.memory_space<vmem>>) attributes {dimension_semantics = [#tpu.dimension_semantics<parallel>, #tpu.dimension_semantics<parallel>], iteration_bounds = array<i64: 1, 1>, scalar_prefetch = 0 : i64, scratch_operands = 0 : i64, tpu.core_type = #tpu.core_type<tc>, window_params = [{transform_indices = @transform_0, window_bounds = array<i64: 8, 256>}, {transform_indices = @transform_1, window_bounds = array<i64: 256, 224>}, {transform_indices = @transform_2, window_bounds = array<i64: 1, 224>}, {transform_indices = @transform_3, window_bounds = array<i64: 8, 224>}]} {
    %c0 = arith.constant 0 : index
    %c0_0 = arith.constant 0 : index
    %0 = vector.load %arg2[%c0, %c0_0] : memref<8x256xf32, #tpu.memory_space<vmem>>, vector<8x256xf32>
    %1 = arith.truncf %0 : vector<8x256xf32> to vector<8x256xbf16>
    %c0_1 = arith.constant 0 : index
    %c0_2 = arith.constant 0 : index
    %2 = vector.load %arg3[%c0_1, %c0_2] : memref<256x224xbf16, #tpu.memory_space<vmem>>, vector<256x224xbf16>
    %cst = arith.constant dense<0.000000e+00> : vector<8x224xf32>
    %3 = tpu.matmul %1, %2, %cst {dimension_numbers = #tpu.dot_dimension_numbers<[1], [0], [0], [1], [0, 0, 1, 1], [], []>} : vector<8x256xbf16>, vector<256x224xbf16>, vector<8x224xf32> -> vector<8x224xf32>
    %c0_3 = arith.constant 0 : index
    %c0_4 = arith.constant 0 : index
    %4 = vector.load %arg4[%c0_3, %c0_4] : memref<1x224xf32, #tpu.memory_space<vmem>>, vector<1x224xf32>
    %5 = vector.broadcast %4 : vector<1x224xf32> to vector<8x224xf32>
    %6 = arith.addf %3, %5 : vector<8x224xf32>
    %7 = arith.truncf %6 : vector<8x224xf32> to vector<8x224xbf16>
    %c0_5 = arith.constant 0 : index
    %c0_6 = arith.constant 0 : index
    %8 = vector.load %arg5[%c0_5, %c0_6] : memref<8x224xbf16, #tpu.memory_space<vmem>>, vector<8x224xbf16>
    tpu.vector_store %arg5[%c0_5, %c0_6], %7 {strides = array<i32>} : memref<8x224xbf16, #tpu.memory_space<vmem>>, vector<8x224xbf16>,
    return
  }
  func.func @transform_0(%arg0: i32, %arg1: i32) -> (i32, i32) {
    %c0_i32 = arith.constant 0 : i32
    %c0_i32_0 = arith.constant 0 : i32
    return %arg0, %c0_i32 : i32, i32
  }
  func.func @transform_1(%arg0: i32, %arg1: i32) -> (i32, i32) {
    %c0_i32 = arith.constant 0 : i32
    %c0_i32_0 = arith.constant 0 : i32
    return %c0_i32, %arg1 : i32, i32
  }
  func.func @transform_2(%arg0: i32, %arg1: i32) -> (i32, i32) {
    %c0_i32 = arith.constant 0 : i32
    %c0_i32_0 = arith.constant 0 : i32
    return %c0_i32, %arg1 : i32, i32
  }
  func.func @transform_3(%arg0: i32, %arg1: i32) -> (i32, i32) {
    %c0_i32 = arith.constant 0 : i32
    return %arg0, %arg1 : i32, i32
  }
}

</mosaic_0001>

<bundles_post_ra>
// kernel: tpu_custom_call.1
= control target key start
LH: loop header
LB: loop body
LE: loop exit
PB: predicated region body
PF: predicated region fallthrough
CT: control target
= control target key end

     0   :  { %s702_s0 = inlined_call_operand.vmem [shape: f32[8,256], index: 0, kind: input, shape index: {}]   ;;  %s703_s1 = inlined_call_operand.vmem [shape: bf16[256,224], index: 1, kind: input, shape index: {}]   ;;  %s704_s2 = inlined_call_operand.vmem [shape: f32[1,224], index: 2, kind: input, shape index: {}]   ;;  %s705_s3 = inlined_call_operand.hbm [shape: bf16[8,224], index: 3, kind: output, shape index: {}]  }
   0x1   :  { %v348_v0 = vld [vmem:[%s703_s1 + $0x70] sm:$0xf]  ;;  %v433_v1 = vld [vmem:[%s703_s1 + $0x74] sm:$0xf0]  ;;  %v432_v5 = vld [vmem:[%s703_s1 + $0x74] sm:$0xf] }
   0x2   :  { %v412_v2 = vld [vmem:[%s703_s1 + $0xf0] sm:$0xf]  ;;  %v349_v3 = vor.u32 %v433_v1, %v348_v0  ;;  %v449_v4 = vld [vmem:[%s703_s1 + $0xf4] sm:$0xf0]  ;;  %v350_v6 = vld [vmem:[%s703_s1 + $0x78] sm:$0xf0] }
   0x3   :  { %v413_v7 = vor.u32 %v449_v4, %v412_v2  ;;  %v353_v8 = vor.u32 %v432_v5, %v350_v6  ;;  %v448_v9 = vld [vmem:[%s703_s1 + $0xf4] sm:$0xf]  ;;  %v414_v10 = vld [vmem:[%s703_s1 + $0xf8] sm:$0xf0]  ;;  %v340_v11 = vld [vmem:[%s703_s1 + $0x60] sm:$0xf] }
   0x4   :  { %217 = vmatpush.bf16.msra.mxu0 %v349_v3  ;;  %v417_v12 = vor.u32 %v448_v9, %v414_v10  ;;  %v431_v13 = vld [vmem:[%s703_s1 + $0x64] sm:$0xf0]  ;;  %v404_v14 = vld [vmem:[%s703_s1 + $0xe0] sm:$0xf]  ;;  %v430_v18 = vld [vmem:[%s703_s1 + $0x64] sm:$0xf] }
   0x5   :  { %v447_v15 = vld [vmem:[%s703_s1 + $0xe4] sm:$0xf0]  ;;  %230 = vmatpush.bf16.msra.mxu1 %v413_v7  ;;  %243 = vmatpush.bf16.msra.mxu2 %v353_v8  ;;  %v341_v16 = vor.u32 %v431_v13, %v340_v11  ;;  %v342_v19 = vld [vmem:[%s703_s1 + $0x68] sm:$0xf0]  ;;  %v446_v20 = vld [vmem:[%s703_s1 + $0xe4] sm:$0xf] }
   0x6   :  { %v405_v17 = vor.u32 %v447_v15, %v404_v14  ;;  %256 = vmatpush.bf16.msra.mxu3 %v417_v12  ;;  %v345_v21 = vor.u32 %v430_v18, %v342_v19  ;;  %v406_v22 = vld [vmem:[%s703_s1 + $0xe8] sm:$0xf0]  ;;  %v332_v23 = vld [vmem:[%s703_s1 + $0x50] sm:$0xf]  ;;  %v429_v24 = vld [vmem:[%s703_s1 + $0x54] sm:$0xf0] }
   0x7   :  { %v409_v25 = vor.u32 %v446_v20, %v406_v22  ;;  %v396_v26 = vld [vmem:[%s703_s1 + $0xd0] sm:$0xf]  ;;  %v445_v27 = vld [vmem:[%s703_s1 + $0xd4] sm:$0xf0]  ;;  %v428_v28 = vld [vmem:[%s703_s1 + $0x54] sm:$0xf]  ;;  %v333_v29 = vor.u32 %v429_v24, %v332_v23 }
   0x8   :  { %218 = vmatpush.bf16.msra.mxu0 %v341_v16  ;;  %v334_v30 = vld [vmem:[%s703_s1 + $0x58] sm:$0xf0]  ;;  %v444_v31 = vld [vmem:[%s703_s1 + $0xd4] sm:$0xf]  ;;  %v397_v33 = vor.u32 %v445_v27, %v396_v26  ;;  %v324_v35 = vld [vmem:[%s703_s1 + $0x40] sm:$0xf] }
   0x9   :  { %v398_v32 = vld [vmem:[%s703_s1 + $0xd8] sm:$0xf0]  ;;  %231 = vmatpush.bf16.msra.mxu1 %v405_v17  ;;  %244 = vmatpush.bf16.msra.mxu2 %v345_v21  ;;  %v337_v34 = vor.u32 %v428_v28, %v334_v30  ;;  %v427_v36 = vld [vmem:[%s703_s1 + $0x44] sm:$0xf0]  ;;  %v388_v37 = vld [vmem:[%s703_s1 + $0xc0] sm:$0xf] }
   0xa   :  { %257 = vmatpush.bf16.msra.mxu3 %v409_v25  ;;  %v401_v38 = vor.u32 %v444_v31, %v398_v32  ;;  %v443_v39 = vld [vmem:[%s703_s1 + $0xc4] sm:$0xf0]  ;;  %v426_v40 = vld [vmem:[%s703_s1 + $0x44] sm:$0xf]  ;;  %v326_v41 = vld [vmem:[%s703_s1 + $0x48] sm:$0xf0]  ;;  %v325_v44 = vor.u32 %v427_v36, %v324_v35 }
   0xb   :  { %v442_v42 = vld [vmem:[%s703_s1 + $0xc4] sm:$0xf]  ;;  %v390_v43 = vld [vmem:[%s703_s1 + $0xc8] sm:$0xf0]  ;;  %v389_v45 = vor.u32 %v443_v39, %v388_v37  ;;  %v329_v46 = vor.u32 %v426_v40, %v326_v41  ;;  %v316_v47 = vld [vmem:[%s703_s1 + $0x30] sm:$0xf] }
   0xc   :  { %219 = vmatpush.bf16.msra.mxu0 %v333_v29  ;;  %v425_v48 = vld [vmem:[%s703_s1 + $0x34] sm:$0xf0]  ;;  %v380_v49 = vld [vmem:[%s703_s1 + $0xb0] sm:$0xf]  ;;  %v393_v50 = vor.u32 %v442_v42, %v390_v43  ;;  %v424_v52 = vld [vmem:[%s703_s1 + $0x34] sm:$0xf] }
   0xd   :  { %232 = vmatpush.bf16.msra.mxu1 %v397_v33  ;;  %245 = vmatpush.bf16.msra.mxu2 %v337_v34  ;;  %v441_v51 = vld [vmem:[%s703_s1 + $0xb4] sm:$0xf0]  ;;  %v318_v53 = vld [vmem:[%s703_s1 + $0x38] sm:$0xf0]  ;;  %v440_v54 = vld [vmem:[%s703_s1 + $0xb4] sm:$0xf]  ;;  %v317_v56 = vor.u32 %v425_v48, %v316_v47 }
   0xe   :  { %258 = vmatpush.bf16.msra.mxu3 %v401_v38  ;;  %v382_v55 = vld [vmem:[%s703_s1 + $0xb8] sm:$0xf0]  ;;  %v381_v57 = vor.u32 %v441_v51, %v380_v49  ;;  %v321_v58 = vor.u32 %v424_v52, %v318_v53  ;;  %v308_v59 = vld [vmem:[%s703_s1 + $0x20] sm:$0xf]  ;;  %v423_v60 = vld [vmem:[%s703_s1 + $0x24] sm:$0xf0] }
   0xf   :  { %v372_v61 = vld [vmem:[%s703_s1 + $0xa0] sm:$0xf]  ;;  %v385_v62 = vor.u32 %v440_v54, %v382_v55  ;;  %v439_v63 = vld [vmem:[%s703_s1 + $0xa4] sm:$0xf0]  ;;  %v422_v0 = vld [vmem:[%s703_s1 + $0x24] sm:$0xf]  ;;  %v309_v4 = vor.u32 %v423_v60, %v308_v59 }
  0x10   :  { %220 = vmatpush.bf16.msra.mxu0 %v325_v44  ;;  %v310_v1 = vld [vmem:[%s703_s1 + $0x28] sm:$0xf0]  ;;  %v438_v2 = vld [vmem:[%s703_s1 + $0xa4] sm:$0xf]  ;;  %v373_v5 = vor.u32 %v439_v63, %v372_v61  ;;  %v300_v7 = vld [vmem:[%s703_s1 + $0x10] sm:$0xf] }
  0x11   :  { %233 = vmatpush.bf16.msra.mxu1 %v389_v45  ;;  %246 = vmatpush.bf16.msra.mxu2 %v329_v46  ;;  %v374_v3 = vld [vmem:[%s703_s1 + $0xa8] sm:$0xf0]  ;;  %v313_v6 = vor.u32 %v422_v0, %v310_v1  ;;  %v421_v8 = vld [vmem:[%s703_s1 + $0x14] sm:$0xf0]  ;;  %v364_v9 = vld [vmem:[%s703_s1 + $0x90] sm:$0xf] }
  0x12   :  { %259 = vmatpush.bf16.msra.mxu3 %v393_v50  ;;  %v377_v10 = vor.u32 %v438_v2, %v374_v3  ;;  %v437_v11 = vld [vmem:[%s703_s1 + $0x94] sm:$0xf0]  ;;  %v420_v12 = vld [vmem:[%s703_s1 + $0x14] sm:$0xf]  ;;  %v302_v13 = vld [vmem:[%s703_s1 + $0x18] sm:$0xf0] }
  0x13   :  { %v436_v14 = vld [vmem:[%s703_s1 + $0x94] sm:$0xf]  ;;  %v366_v15 = vld [vmem:[%s703_s1 + $0x98] sm:$0xf0] }
  0x14   :  { %221 = vmatpush.bf16.msra.mxu0 %v317_v56 }
  0x15   :  { %234 = vmatpush.bf16.msra.mxu1 %v381_v57  ;;  %247 = vmatpush.bf16.msra.mxu2 %v321_v58 }
  0x16   :  { %260 = vmatpush.bf16.msra.mxu3 %v385_v62 }
  0x17   :  { %8 = vsyncpa [#allocation3], 0  ;;  %v301_v16 = vor.u32 %v421_v8, %v300_v7  ;;  %v365_v17 = vor.u32 %v437_v11, %v364_v9  ;;  %v305_v18 = vor.u32 %v420_v12, %v302_v13  ;;  %v292_v19 = vld [vmem:[%s703_s1] sm:$0xf]  ;;  %v419_v20 = vld [vmem:[%s703_s1 + $0x4] sm:$0xf0]  ;;  %v369_v22 = vor.u32 %v436_v14, %v366_v15 }
  0x18   :  { %222 = vmatpush.bf16.msra.mxu0 %v309_v4  ;;  %v356_v21 = vld [vmem:[%s703_s1 + $0x80] sm:$0xf]  ;;  %v435_v23 = vld [vmem:[%s703_s1 + $0x84] sm:$0xf0]  ;;  %v418_v24 = vld [vmem:[%s703_s1 + $0x4] sm:$0xf]  ;;  %v293_v28 = vor.u32 %v419_v20, %v292_v19 }
  0x19   :  { %235 = vmatpush.bf16.msra.mxu1 %v373_v5  ;;  %248 = vmatpush.bf16.msra.mxu2 %v313_v6  ;;  %v294_v25 = vld [vmem:[%s703_s1 + $0x8] sm:$0xf0]  ;;  %v434_v26 = vld [vmem:[%s703_s1 + $0x84] sm:$0xf]  ;;  %v357_v30 = vor.u32 %v435_v23, %v356_v21  ;;  %v51_v36 = vld [vmem:[%s704_s2] sm:$0x3] }
  0x1a   :  { %261 = vmatpush.bf16.msra.mxu3 %v377_v10  ;;  %v358_v27 = vld [vmem:[%s703_s1 + $0x88] sm:$0xf0]  ;;  %v15_v29 = vld [vmem:[%s702_s0] sm:$0xff]  ;;  %v297_v31 = vor.u32 %v418_v24, %v294_v25  ;;  %v53_v39 = vperm.slane %v51_v36, 0  ;;  %v54_v40 = vperm.slane %v51_v36, 1  ;;  %vm270_vm0 = vcmask 1043456  }
  0x1b   :  { %v16_v32 = vld [vmem:[%s702_s0 + $0x8] sm:$0xff]  ;;  %v361_v33 = vor.u32 %v434_v26, %v358_v27  ;;  %v17_v34 = vpack.c.bf16 %v15_v29, %v15_v29  ;;  %vm271_vm1 = vcmask 785412   ;;  %s477_s0 = smov [#allocation2]   ;;  %s281_s13 = sshll.u32 %s705_s3, 4  ;;  %s282_s13 = int_to_ptr.hbm [resolvable:$true] %s281_s13 }
  0x1c   :  { %223 = vmatpush.bf16.msra.mxu0 %v301_v16  ;;  %v18_v35 = vpack.c.bf16 %v16_v32, %v16_v32  ;;  %s279_s10 = sshll.u32 %s477_s0, 4  ;;  %vm272_vm2 = vmor %vm271_vm1, %vm270_vm0  ;;  %s280_s10 = int_to_ptr.vmem [resolvable:$true] %s279_s10 }
  0x1d   :  { %236 = vmatpush.bf16.msra.mxu1 %v365_v17  ;;  %249 = vmatpush.bf16.msra.mxu2 %v305_v18 }
  0x1e   :  { %262 = vmatpush.bf16.msra.mxu3 %v369_v22 }
  0x20   :  { %224 = vmatpush.bf16.msra.mxu0 %v293_v28 }
  0x21   :  { %237 = vmatpush.bf16.msra.mxu1 %v357_v30  ;;  %250 = vmatpush.bf16.msra.mxu2 %v297_v31 }
  0x22   :  { %263 = vmatpush.bf16.msra.mxu3 %v361_v33 }
  0x23   :  { %225 = vmatmul.bf16.vlgmr.msra.gmra.mxu0 %v17_v34 }
  0x24   :  { %238 = vmatmul.bf16.vlgmr.msra.gmra.mxu1 %v18_v35  ;;  %251 = vmatmul.bf16.vlgmr.msra.gmra.mxu2 %v17_v34 }
  0x25   :  { %264 = vmatmul.bf16.vlgmr.msra.gmra.mxu3 %v18_v35 }
  0xa0   :  { %v226_v37 = vpop.f32.mrf.mxu0 }
  0xa1   :  { %v239_v38 = vpop.f32.mrf.mxu1  ;;  %v227_v41 = vadd.f32 %v226_v37, %v53_v39 }
  0xa3   :  { %v240_v47 = vadd.f32 %v239_v38, %v227_v41 }
  0xa7   :  { %v252_v42 = vpop.f32.mrf.mxu2 }
  0xa8   :  { %v253_v43 = vadd.f32 %v252_v42, %v54_v40  ;;  %v265_v44 = vpop.f32.mrf.mxu3  ;;  %v228_v45 = vpop.f32.mrf.mxu0 }
  0xa9   :  { %v241_v46 = vpop.f32.mrf.mxu1 }
  0xaa   :  { %v266_v48 = vadd.f32 %v265_v44, %v253_v43 }
  0xac   :  { %v269_v49 = vpack.c.bf16 %v266_v48, %v240_v47 }
  0xae   :  { %273 = vst.msk [vmem:[#allocation2] sm:$0xff] %vm272_vm2, %v269_v49 }
  0xaf   :  { %v254_v50 = vpop.f32.mrf.mxu2  ;;  %284 = dma.vmem_to_hbm [thread:$0]  %s280_s10, 128, %s282_s13, [#allocation3]  }
  0xb0   :  { %v267_v51 = vpop.f32.mrf.mxu3 }
  0xb1   :  { %475 = dma.done.wait [#allocation3], 128  }
  0xb2   :  { %476 = vsyncadd [#allocation3], 4294967168 }
  0xb3   :  { %289 = vsyncpa [#allocation3], 1 }

</bundles_post_ra>
